<compile_context>
chip_gen: v6e
topology: v6e:2x2x1
jax: 0.10.0
libtpu: 0.0.40
codegen_flags: <defaults>
</compile_context>

<pallas_src>
import functools

import jax
import jax.numpy as jnp
import numpy as np
from jax import lax
from jax.experimental import pallas as pl
from jax.experimental.pallas import tpu as pltpu

EPS = 1e-5


def _round_up(x, m):
    return (x + m - 1) // m * m


# --------------------------------------------------------------------------
# In-kernel helpers
# --------------------------------------------------------------------------
def _conv3x3_lanes(x, w_mat, mask_ref, H, W):
    """3x3 'same' conv as a single MXU matmul.

    x:        (C, P) activations, P = N*H*W flattened n-major, h, w-minor.
    w_mat:    (Cout, 9*C) weights, tap-major ((kh,kw) outer, c inner).
    mask_ref: (9, P) 0/1 border-validity masks (precomputed, static).
    returns:  (Cout, P) f32.
    """
    C, P = x.shape
    cols = []
    t = 0
    for kh in range(3):
        for kw in range(3):
            dh, dw = kh - 1, kw - 1
            s = dh * W + dw                      # lane shift for this tap
            shifted = x if s == 0 else pltpu.roll(x, (-s) % P, axis=1)
            cols.append(shifted * mask_ref[t:t + 1, :])
            t += 1
    xcol = jnp.concatenate(cols, axis=0)         # (9*C, P), tile-aligned concat
    return jnp.dot(w_mat, xcol, preferred_element_type=jnp.float32)


def _bn_affine(z, gamma, beta, inv_count):
    """Training-mode BN folded into per-channel scale/shift (biased var)."""
    mean = jnp.sum(z, axis=1, keepdims=True) * inv_count            # (C, 1)
    var = jnp.sum(z * z, axis=1, keepdims=True) * inv_count - mean * mean
    scale = gamma * lax.rsqrt(var + EPS)
    shift = beta - mean * scale
    return scale, shift


# --------------------------------------------------------------------------
# Kernels
# --------------------------------------------------------------------------
def _conv1_bnstats_kernel(x_ref, mask_ref, w_ref, g_ref, b_ref,
                          z_ref, scale_ref, shift_ref, *, H, W, inv_count):
    # conv1 on the pooled input + BN1 scale/shift from its own output.
    z = _conv3x3_lanes(x_ref[...], w_ref[...], mask_ref, H, W)
    z_ref[...] = z
    s, t = _bn_affine(z, g_ref[...], b_ref[...], inv_count)
    scale_ref[...] = s
    shift_ref[...] = t


def _bnrelu_conv_bnstats_kernel(x_ref, sc_in_ref, sh_in_ref, mask_ref, w_ref,
                                g_ref, b_ref, z_ref, scale_ref, shift_ref,
                                *, H, W, inv_count):
    # BN1 affine + ReLU (f32 VPU) + conv2 + BN2 scale/shift.
    a = jnp.maximum(x_ref[...] * sc_in_ref[...] + sh_in_ref[...], 0.0)
    z = _conv3x3_lanes(a, w_ref[...], mask_ref, H, W)
    z_ref[...] = z
    s, t = _bn_affine(z, g_ref[...], b_ref[...], inv_count)
    scale_ref[...] = s
    shift_ref[...] = t


def _bnrelu_kernel(x_ref, sc_ref, sh_ref, o_ref):
    # Final BN2 affine + ReLU (lane-dense elementwise store).
    o_ref[...] = jnp.maximum(x_ref[...] * sc_ref[...] + sh_ref[...], 0.0)


# --------------------------------------------------------------------------
# Wrapper
# --------------------------------------------------------------------------
def _tap_masks(N, H, W):
    """Static (9, N*H*W) 0/1 masks marking which rolled positions are valid."""
    q = np.arange(N * H * W)
    h = (q % (H * W)) // W
    w = q % W
    masks = []
    for kh in range(3):
        for kw in range(3):
            dh, dw = kh - 1, kw - 1
            valid = (h + dh >= 0) & (h + dh < H) & (w + dw >= 0) & (w + dw < W)
            masks.append(valid.astype(np.float32))
    return jnp.asarray(np.stack(masks, axis=0))


def down_forward(x_nchw, params):
    """Forward pass of `Down(in_channels, out_channels)` (training-mode BN)."""
    w1, g1, b1, w2, g2, b2 = params
    N, Cin, H, W = x_nchw.shape
    Cout = w1.shape[0]
    assert H % 2 == 0 and W % 2 == 0, "spatial dims must be even for MaxPool2d(2)"
    assert Cout % 8 == 0, "out_channels should be a multiple of 8 (sublane tile)"
    H2, W2 = H // 2, W // 2
    P = N * H2 * W2
    Cin_p = _round_up(Cin, 8)

    x = x_nchw.astype(jnp.float32)

    # MaxPool2d(2): tiny, layout-hostile at C=4 -> XLA glue.
    xp = x.reshape(N, Cin, H2, 2, W2, 2).max(axis=(3, 5))           # (N,Cin,H2,W2)

    # Channel-major layout: channels -> sublanes, (n,h,w) -> lanes.
    if Cin_p != Cin:
        xp = jnp.pad(xp, ((0, 0), (0, Cin_p - Cin), (0, 0), (0, 0)))
    x2d = jnp.transpose(xp, (1, 0, 2, 3)).reshape(Cin_p, P)

    # Weights: OIHW -> (Cout, 9*C) tap-major, cin-minor (matches im2col order).
    w1p = jnp.pad(w1, ((0, 0), (0, Cin_p - Cin), (0, 0), (0, 0))) if Cin_p != Cin else w1
    w1m = jnp.transpose(w1p, (0, 2, 3, 1)).reshape(Cout, 9 * Cin_p).astype(jnp.float32)
    w2m = jnp.transpose(w2, (0, 2, 3, 1)).reshape(Cout, 9 * Cout).astype(jnp.float32)

    g1c = g1.reshape(Cout, 1).astype(jnp.float32)
    b1c = b1.reshape(Cout, 1).astype(jnp.float32)
    g2c = g2.reshape(Cout, 1).astype(jnp.float32)
    b2c = b2.reshape(Cout, 1).astype(jnp.float32)

    masks = _tap_masks(N, H2, W2)                                   # (9, P)
    inv_count = 1.0 / float(P)

    vmem = pl.BlockSpec(memory_space=pltpu.MemorySpace.VMEM)

    # ---- kernel 1: conv1 + BN1 scale/shift --------------------------------
    z1, sc1, sh1 = pl.pallas_call(
        functools.partial(_conv1_bnstats_kernel, H=H2, W=W2, inv_count=inv_count),
        out_shape=(jax.ShapeDtypeStruct((Cout, P), jnp.float32),
                   jax.ShapeDtypeStruct((Cout, 1), jnp.float32),
                   jax.ShapeDtypeStruct((Cout, 1), jnp.float32)),
        in_specs=[vmem] * 5,
        out_specs=(vmem, vmem, vmem),
    )(x2d, masks, w1m, g1c, b1c)

    # ---- kernel 2: BN1 affine + ReLU + conv2 + BN2 scale/shift -------------
    z2, sc2, sh2 = pl.pallas_call(
        functools.partial(_bnrelu_conv_bnstats_kernel, H=H2, W=W2, inv_count=inv_count),
        out_shape=(jax.ShapeDtypeStruct((Cout, P), jnp.float32),
                   jax.ShapeDtypeStruct((Cout, 1), jnp.float32),
                   jax.ShapeDtypeStruct((Cout, 1), jnp.float32)),
        in_specs=[vmem] * 7,
        out_specs=(vmem, vmem, vmem),
    )(z1, sc1, sh1, masks, w2m, g2c, b2c)

    # ---- kernel 3: BN2 affine + ReLU ---------------------------------------
    y = pl.pallas_call(
        _bnrelu_kernel,
        out_shape=jax.ShapeDtypeStruct((Cout, P), jnp.float32),
        in_specs=[vmem] * 3,
        out_specs=vmem,
    )(z2, sc2, sh2)

    # Back to NCHW (pure reshape + small transpose of the final map).
    return jnp.transpose(y.reshape(Cout, N, H2, W2), (1, 0, 2, 3))


# --------------------------------------------------------------------------
# Pure-JAX reference (independent compute path: lax.conv)
# --------------------------------------------------------------------------
def reference_down(x_nchw, params):
    w1, g1, b1, w2, g2, b2 = params
    x = x_nchw.astype(jnp.float32)
    N, Cin, H, W = x.shape

    xp = x.reshape(N, Cin, H // 2, 2, W // 2, 2).max(axis=(3, 5))

    def conv3x3(t, w):
        return lax.conv_general_dilated(
            t, w, (1, 1), ((1, 1), (1, 1)),
            dimension_numbers=("NCHW", "OIHW", "NCHW"))

    def bn_relu(t, gamma, beta):
        mean = t.mean(axis=(0, 2, 3))
        var = ((t - mean[None, :, None, None]) ** 2).mean(axis=(0, 2, 3))
        th = (t - mean[None, :, None, None]) * lax.rsqrt(var + EPS)[None, :, None, None]
        return jnp.maximum(th * gamma[None, :, None, None] + beta[None, :, None, None], 0.0)

    z1 = conv3x3(xp, w1)
    a1 = bn_relu(z1, g1, b1)
    z2 = conv3x3(a1, w2)
    return bn_relu(z2, g2, b2)


# --------------------------------------------------------------------------
if __name__ == "__main__":
    N, Cin, H, W = 2, 4, 16, 16
    Cout = 8

    key = jax.random.PRNGKey(0)
    k = jax.random.split(key, 7)
    w1 = 0.2 * jax.random.normal(k[0], (Cout, Cin, 3, 3), jnp.float32)   # OIHW
    g1 = 1.0 + 0.1 * jax.random.normal(k[1], (Cout,), jnp.float32)
    b1 = 0.1 * jax.random.normal(k[2], (Cout,), jnp.float32)
    w2 = 0.2 * jax.random.normal(k[3], (Cout, Cout, 3, 3), jnp.float32)  # OIHW
    g2 = 1.0 + 0.1 * jax.random.normal(k[4], (Cout,), jnp.float32)
    b2 = 0.1 * jax.random.normal(k[5], (Cout,), jnp.float32)
    x = jax.random.normal(k[6], (N, Cin, H, W), jnp.float32)
    params = (w1, g1, b1, w2, g2, b2)

    out = jax.block_until_ready(jax.jit(down_forward)(x, params))
    ref = jax.block_until_ready(reference_down(x, params))

    assert out.shape == (N, Cout, H // 2, W // 2), out.shape
    max_err = float(jnp.max(jnp.abs(out - ref)))
    assert jnp.allclose(out, ref, rtol=1e-3, atol=5e-4), max_err
    print("KERNEL_OK")
</pallas_src>

<mosaic_0001>
module attributes {stable_mosaic.version = 11 : i64} {
  func.func @_conv1_bnstats_kernel(%arg0: memref<8x128xf32, #tpu.memory_space<vmem>>, %arg1: memref<9x128xf32, #tpu.memory_space<vmem>>, %arg2: memref<8x72xf32, #tpu.memory_space<vmem>>, %arg3: memref<8x1xf32, #tpu.memory_space<vmem>>, %arg4: memref<8x1xf32, #tpu.memory_space<vmem>>, %arg5: memref<8x128xf32, #tpu.memory_space<vmem>>, %arg6: memref<8x1xf32, #tpu.memory_space<vmem>>, %arg7: memref<8x1xf32, #tpu.memory_space<vmem>>) attributes {dimension_semantics = [], scalar_prefetch = 0 : i64, scratch_operands = 0 : i64, tpu.core_type = #tpu.core_type<tc>} {
    %c0 = arith.constant 0 : index
    %c0_0 = arith.constant 0 : index
    %0 = vector.load %arg0[%c0, %c0_0] : memref<8x128xf32, #tpu.memory_space<vmem>>, vector<8x128xf32>
    %c0_1 = arith.constant 0 : index
    %c0_2 = arith.constant 0 : index
    %1 = vector.load %arg2[%c0_1, %c0_2] : memref<8x72xf32, #tpu.memory_space<vmem>>, vector<8x72xf32>
    %c9_i32 = arith.constant 9 : i32
    %2 = tpu.dynamic_rotate %0 by %c9_i32 dim 1 : vector<8x128xf32>, i32 -> vector<8x128xf32>
    %c0_3 = arith.constant 0 : index
    %c0_4 = arith.constant 0 : index
    %3 = vector.load %arg1[%c0_3, %c0_4] : memref<9x128xf32, #tpu.memory_space<vmem>>, vector<1x128xf32>
    %4 = vector.broadcast %3 : vector<1x128xf32> to vector<8x128xf32>
    %5 = arith.mulf %2, %4 : vector<8x128xf32>
    %c8_i32 = arith.constant 8 : i32
    %6 = tpu.dynamic_rotate %0 by %c8_i32 dim 1 : vector<8x128xf32>, i32 -> vector<8x128xf32>
    %c1 = arith.constant 1 : index
    %c0_5 = arith.constant 0 : index
    %7 = vector.load %arg1[%c1, %c0_5] : memref<9x128xf32, #tpu.memory_space<vmem>>, vector<1x128xf32>
    %8 = vector.broadcast %7 : vector<1x128xf32> to vector<8x128xf32>
    %9 = arith.mulf %6, %8 : vector<8x128xf32>
    %c7_i32 = arith.constant 7 : i32
    %10 = tpu.dynamic_rotate %0 by %c7_i32 dim 1 : vector<8x128xf32>, i32 -> vector<8x128xf32>
    %c2 = arith.constant 2 : index
    %c0_6 = arith.constant 0 : index
    %11 = vector.load %arg1[%c2, %c0_6] : memref<9x128xf32, #tpu.memory_space<vmem>>, vector<1x128xf32>
    %12 = vector.broadcast %11 : vector<1x128xf32> to vector<8x128xf32>
    %13 = arith.mulf %10, %12 : vector<8x128xf32>
    %c1_i32 = arith.constant 1 : i32
    %14 = tpu.dynamic_rotate %0 by %c1_i32 dim 1 : vector<8x128xf32>, i32 -> vector<8x128xf32>
    %c3 = arith.constant 3 : index
    %c0_7 = arith.constant 0 : index
    %15 = vector.load %arg1[%c3, %c0_7] : memref<9x128xf32, #tpu.memory_space<vmem>>, vector<1x128xf32>
    %16 = vector.broadcast %15 : vector<1x128xf32> to vector<8x128xf32>
    %17 = arith.mulf %14, %16 : vector<8x128xf32>
    %c4 = arith.constant 4 : index
    %c0_8 = arith.constant 0 : index
    %18 = vector.load %arg1[%c4, %c0_8] : memref<9x128xf32, #tpu.memory_space<vmem>>, vector<1x128xf32>
    %19 = vector.broadcast %18 : vector<1x128xf32> to vector<8x128xf32>
    %20 = arith.mulf %0, %19 : vector<8x128xf32>
    %c127_i32 = arith.constant 127 : i32
    %21 = tpu.dynamic_rotate %0 by %c127_i32 dim 1 : vector<8x128xf32>, i32 -> vector<8x128xf32>
    %c5 = arith.constant 5 : index
    %c0_9 = arith.constant 0 : index
    %22 = vector.load %arg1[%c5, %c0_9] : memref<9x128xf32, #tpu.memory_space<vmem>>, vector<1x128xf32>
    %23 = vector.broadcast %22 : vector<1x128xf32> to vector<8x128xf32>
    %24 = arith.mulf %21, %23 : vector<8x128xf32>
    %c121_i32 = arith.constant 121 : i32
    %25 = tpu.dynamic_rotate %0 by %c121_i32 dim 1 : vector<8x128xf32>, i32 -> vector<8x128xf32>
    %c6 = arith.constant 6 : index
    %c0_10 = arith.constant 0 : index
    %26 = vector.load %arg1[%c6, %c0_10] : memref<9x128xf32, #tpu.memory_space<vmem>>, vector<1x128xf32>
    %27 = vector.broadcast %26 : vector<1x128xf32> to vector<8x128xf32>
    %28 = arith.mulf %25, %27 : vector<8x128xf32>
    %c120_i32 = arith.constant 120 : i32
    %29 = tpu.dynamic_rotate %0 by %c120_i32 dim 1 : vector<8x128xf32>, i32 -> vector<8x128xf32>
    %c7 = arith.constant 7 : index
    %c0_11 = arith.constant 0 : index
    %30 = vector.load %arg1[%c7, %c0_11] : memref<9x128xf32, #tpu.memory_space<vmem>>, vector<1x128xf32>
    %31 = vector.broadcast %30 : vector<1x128xf32> to vector<8x128xf32>
    %32 = arith.mulf %29, %31 : vector<8x128xf32>
    %c119_i32 = arith.constant 119 : i32
    %33 = tpu.dynamic_rotate %0 by %c119_i32 dim 1 : vector<8x128xf32>, i32 -> vector<8x128xf32>
    %c8 = arith.constant 8 : index
    %c0_12 = arith.constant 0 : index
    %34 = vector.load %arg1[%c8, %c0_12] : memref<9x128xf32, #tpu.memory_space<vmem>>, vector<1x128xf32>
    %35 = vector.broadcast %34 : vector<1x128xf32> to vector<8x128xf32>
    %36 = arith.mulf %33, %35 : vector<8x128xf32>
    %37 = tpu.concatenate %5, %9, %13, %17, %20, %24, %28, %32, %36 in 0 : vector<8x128xf32>, vector<8x128xf32>, vector<8x128xf32>, vector<8x128xf32>, vector<8x128xf32>, vector<8x128xf32>, vector<8x128xf32>, vector<8x128xf32>, vector<8x128xf32> -> vector<72x128xf32>
    %cst = arith.constant dense<0.000000e+00> : vector<8x128xf32>
    %38 = tpu.matmul %1, %37, %cst {dimension_numbers = #tpu.dot_dimension_numbers<[1], [0], [0], [1], [0, 0, 1, 1], [], []>} : vector<8x72xf32>, vector<72x128xf32>, vector<8x128xf32> -> vector<8x128xf32>
    %c0_13 = arith.constant 0 : index
    %c0_14 = arith.constant 0 : index
    %39 = vector.load %arg5[%c0_13, %c0_14] : memref<8x128xf32, #tpu.memory_space<vmem>>, vector<8x128xf32>
    tpu.vector_store %arg5[%c0_13, %c0_14], %38 {strides = array<i32>} : memref<8x128xf32, #tpu.memory_space<vmem>>, vector<8x128xf32>,
    %c0_15 = arith.constant 0 : index
    %c0_16 = arith.constant 0 : index
    %40 = vector.load %arg3[%c0_15, %c0_16] : memref<8x1xf32, #tpu.memory_space<vmem>>, vector<8x1xf32>
    %c0_17 = arith.constant 0 : index
    %c0_18 = arith.constant 0 : index
    %41 = vector.load %arg4[%c0_17, %c0_18] : memref<8x1xf32, #tpu.memory_space<vmem>>, vector<8x1xf32>
    %cst_19 = arith.constant dense<0.000000e+00> : vector<8xf32>
    %42 = vector.multi_reduction <add>, %38, %cst_19 [1] : vector<8x128xf32> to vector<8xf32>
    %43 = vector.shape_cast %42 : vector<8xf32> to vector<8x1xf32>
    %cst_20 = arith.constant 7.812500e-03 : f32
    %44 = vector.broadcast %cst_20 : f32 to vector<8x1xf32>
    %45 = arith.mulf %43, %44 : vector<8x1xf32>
    %46 = arith.mulf %38, %38 : vector<8x128xf32>
    %cst_21 = arith.constant dense<0.000000e+00> : vector<8xf32>
    %47 = vector.multi_reduction <add>, %46, %cst_21 [1] : vector<8x128xf32> to vector<8xf32>
    %48 = vector.shape_cast %47 : vector<8xf32> to vector<8x1xf32>
    %cst_22 = arith.constant 7.812500e-03 : f32
    %49 = vector.broadcast %cst_22 : f32 to vector<8x1xf32>
    %50 = arith.mulf %48, %49 : vector<8x1xf32>
    %51 = arith.mulf %45, %45 : vector<8x1xf32>
    %52 = arith.subf %50, %51 : vector<8x1xf32>
    %cst_23 = arith.constant 9.99999974E-6 : f32
    %53 = vector.broadcast %cst_23 : f32 to vector<8x1xf32>
    %54 = arith.addf %52, %53 : vector<8x1xf32>
    %55 = math.rsqrt %54 : vector<8x1xf32>
    %56 = arith.mulf %40, %55 : vector<8x1xf32>
    %57 = arith.mulf %45, %56 : vector<8x1xf32>
    %58 = arith.subf %41, %57 : vector<8x1xf32>
    %c0_24 = arith.constant 0 : index
    %c0_25 = arith.constant 0 : index
    %59 = vector.load %arg6[%c0_24, %c0_25] : memref<8x1xf32, #tpu.memory_space<vmem>>, vector<8x1xf32>
    tpu.vector_store %arg6[%c0_24, %c0_25], %56 {strides = array<i32>} : memref<8x1xf32, #tpu.memory_space<vmem>>, vector<8x1xf32>,
    %c0_26 = arith.constant 0 : index
    %c0_27 = arith.constant 0 : index
    %60 = vector.load %arg7[%c0_26, %c0_27] : memref<8x1xf32, #tpu.memory_space<vmem>>, vector<8x1xf32>
    tpu.vector_store %arg7[%c0_26, %c0_27], %58 {strides = array<i32>} : memref<8x1xf32, #tpu.memory_space<vmem>>, vector<8x1xf32>,
    return
  }
}

module attributes {stable_mosaic.version = 11 : i64} {
  func.func @_bnrelu_conv_bnstats_kernel(%arg0: memref<8x128xf32, #tpu.memory_space<vmem>>, %arg1: memref<8x1xf32, #tpu.memory_space<vmem>>, %arg2: memref<8x1xf32, #tpu.memory_space<vmem>>, %arg3: memref<9x128xf32, #tpu.memory_space<vmem>>, %arg4: memref<8x72xf32, #tpu.memory_space<vmem>>, %arg5: memref<8x1xf32, #tpu.memory_space<vmem>>, %arg6: memref<8x1xf32, #tpu.memory_space<vmem>>, %arg7: memref<8x128xf32, #tpu.memory_space<vmem>>, %arg8: memref<8x1xf32, #tpu.memory_space<vmem>>, %arg9: memref<8x1xf32, #tpu.memory_space<vmem>>) attributes {dimension_semantics = [], scalar_prefetch = 0 : i64, scratch_operands = 0 : i64, tpu.core_type = #tpu.core_type<tc>} {
    %c0 = arith.constant 0 : index
    %c0_0 = arith.constant 0 : index
    %0 = vector.load %arg0[%c0, %c0_0] : memref<8x128xf32, #tpu.memory_space<vmem>>, vector<8x128xf32>
    %c0_1 = arith.constant 0 : index
    %c0_2 = arith.constant 0 : index
    %1 = vector.load %arg1[%c0_1, %c0_2] : memref<8x1xf32, #tpu.memory_space<vmem>>, vector<8x1xf32>
    %2 = vector.broadcast %1 : vector<8x1xf32> to vector<8x128xf32>
    %3 = arith.mulf %0, %2 : vector<8x128xf32>
    %c0_3 = arith.constant 0 : index
    %c0_4 = arith.constant 0 : index
    %4 = vector.load %arg2[%c0_3, %c0_4] : memref<8x1xf32, #tpu.memory_space<vmem>>, vector<8x1xf32>
    %5 = vector.broadcast %4 : vector<8x1xf32> to vector<8x128xf32>
    %6 = arith.addf %3, %5 : vector<8x128xf32>
    %cst = arith.constant 0.000000e+00 : f32
    %7 = vector.broadcast %cst : f32 to vector<8x128xf32>
    %8 = arith.maximumf %6, %7 : vector<8x128xf32>
    %c0_5 = arith.constant 0 : index
    %c0_6 = arith.constant 0 : index
    %9 = vector.load %arg4[%c0_5, %c0_6] : memref<8x72xf32, #tpu.memory_space<vmem>>, vector<8x72xf32>
    %c9_i32 = arith.constant 9 : i32
    %10 = tpu.dynamic_rotate %8 by %c9_i32 dim 1 : vector<8x128xf32>, i32 -> vector<8x128xf32>
    %c0_7 = arith.constant 0 : index
    %c0_8 = arith.constant 0 : index
    %11 = vector.load %arg3[%c0_7, %c0_8] : memref<9x128xf32, #tpu.memory_space<vmem>>, vector<1x128xf32>
    %12 = vector.broadcast %11 : vector<1x128xf32> to vector<8x128xf32>
    %13 = arith.mulf %10, %12 : vector<8x128xf32>
    %c8_i32 = arith.constant 8 : i32
    %14 = tpu.dynamic_rotate %8 by %c8_i32 dim 1 : vector<8x128xf32>, i32 -> vector<8x128xf32>
    %c1 = arith.constant 1 : index
    %c0_9 = arith.constant 0 : index
    %15 = vector.load %arg3[%c1, %c0_9] : memref<9x128xf32, #tpu.memory_space<vmem>>, vector<1x128xf32>
    %16 = vector.broadcast %15 : vector<1x128xf32> to vector<8x128xf32>
    %17 = arith.mulf %14, %16 : vector<8x128xf32>
    %c7_i32 = arith.constant 7 : i32
    %18 = tpu.dynamic_rotate %8 by %c7_i32 dim 1 : vector<8x128xf32>, i32 -> vector<8x128xf32>
    %c2 = arith.constant 2 : index
    %c0_10 = arith.constant 0 : index
    %19 = vector.load %arg3[%c2, %c0_10] : memref<9x128xf32, #tpu.memory_space<vmem>>, vector<1x128xf32>
    %20 = vector.broadcast %19 : vector<1x128xf32> to vector<8x128xf32>
    %21 = arith.mulf %18, %20 : vector<8x128xf32>
    %c1_i32 = arith.constant 1 : i32
    %22 = tpu.dynamic_rotate %8 by %c1_i32 dim 1 : vector<8x128xf32>, i32 -> vector<8x128xf32>
    %c3 = arith.constant 3 : index
    %c0_11 = arith.constant 0 : index
    %23 = vector.load %arg3[%c3, %c0_11] : memref<9x128xf32, #tpu.memory_space<vmem>>, vector<1x128xf32>
    %24 = vector.broadcast %23 : vector<1x128xf32> to vector<8x128xf32>
    %25 = arith.mulf %22, %24 : vector<8x128xf32>
    %c4 = arith.constant 4 : index
    %c0_12 = arith.constant 0 : index
    %26 = vector.load %arg3[%c4, %c0_12] : memref<9x128xf32, #tpu.memory_space<vmem>>, vector<1x128xf32>
    %27 = vector.broadcast %26 : vector<1x128xf32> to vector<8x128xf32>
    %28 = arith.mulf %8, %27 : vector<8x128xf32>
    %c127_i32 = arith.constant 127 : i32
    %29 = tpu.dynamic_rotate %8 by %c127_i32 dim 1 : vector<8x128xf32>, i32 -> vector<8x128xf32>
    %c5 = arith.constant 5 : index
    %c0_13 = arith.constant 0 : index
    %30 = vector.load %arg3[%c5, %c0_13] : memref<9x128xf32, #tpu.memory_space<vmem>>, vector<1x128xf32>
    %31 = vector.broadcast %30 : vector<1x128xf32> to vector<8x128xf32>
    %32 = arith.mulf %29, %31 : vector<8x128xf32>
    %c121_i32 = arith.constant 121 : i32
    %33 = tpu.dynamic_rotate %8 by %c121_i32 dim 1 : vector<8x128xf32>, i32 -> vector<8x128xf32>
    %c6 = arith.constant 6 : index
    %c0_14 = arith.constant 0 : index
    %34 = vector.load %arg3[%c6, %c0_14] : memref<9x128xf32, #tpu.memory_space<vmem>>, vector<1x128xf32>
    %35 = vector.broadcast %34 : vector<1x128xf32> to vector<8x128xf32>
    %36 = arith.mulf %33, %35 : vector<8x128xf32>
    %c120_i32 = arith.constant 120 : i32
    %37 = tpu.dynamic_rotate %8 by %c120_i32 dim 1 : vector<8x128xf32>, i32 -> vector<8x128xf32>
    %c7 = arith.constant 7 : index
    %c0_15 = arith.constant 0 : index
    %38 = vector.load %arg3[%c7, %c0_15] : memref<9x128xf32, #tpu.memory_space<vmem>>, vector<1x128xf32>
    %39 = vector.broadcast %38 : vector<1x128xf32> to vector<8x128xf32>
    %40 = arith.mulf %37, %39 : vector<8x128xf32>
    %c119_i32 = arith.constant 119 : i32
    %41 = tpu.dynamic_rotate %8 by %c119_i32 dim 1 : vector<8x128xf32>, i32 -> vector<8x128xf32>
    %c8 = arith.constant 8 : index
    %c0_16 = arith.constant 0 : index
    %42 = vector.load %arg3[%c8, %c0_16] : memref<9x128xf32, #tpu.memory_space<vmem>>, vector<1x128xf32>
    %43 = vector.broadcast %42 : vector<1x128xf32> to vector<8x128xf32>
    %44 = arith.mulf %41, %43 : vector<8x128xf32>
    %45 = tpu.concatenate %13, %17, %21, %25, %28, %32, %36, %40, %44 in 0 : vector<8x128xf32>, vector<8x128xf32>, vector<8x128xf32>, vector<8x128xf32>, vector<8x128xf32>, vector<8x128xf32>, vector<8x128xf32>, vector<8x128xf32>, vector<8x128xf32> -> vector<72x128xf32>
    %cst_17 = arith.constant dense<0.000000e+00> : vector<8x128xf32>
    %46 = tpu.matmul %9, %45, %cst_17 {dimension_numbers = #tpu.dot_dimension_numbers<[1], [0], [0], [1], [0, 0, 1, 1], [], []>} : vector<8x72xf32>, vector<72x128xf32>, vector<8x128xf32> -> vector<8x128xf32>
    %c0_18 = arith.constant 0 : index
    %c0_19 = arith.constant 0 : index
    %47 = vector.load %arg7[%c0_18, %c0_19] : memref<8x128xf32, #tpu.memory_space<vmem>>, vector<8x128xf32>
    tpu.vector_store %arg7[%c0_18, %c0_19], %46 {strides = array<i32>} : memref<8x128xf32, #tpu.memory_space<vmem>>, vector<8x128xf32>,
    %c0_20 = arith.constant 0 : index
    %c0_21 = arith.constant 0 : index
    %48 = vector.load %arg5[%c0_20, %c0_21] : memref<8x1xf32, #tpu.memory_space<vmem>>, vector<8x1xf32>
    %c0_22 = arith.constant 0 : index
    %c0_23 = arith.constant 0 : index
    %49 = vector.load %arg6[%c0_22, %c0_23] : memref<8x1xf32, #tpu.memory_space<vmem>>, vector<8x1xf32>
    %cst_24 = arith.constant dense<0.000000e+00> : vector<8xf32>
    %50 = vector.multi_reduction <add>, %46, %cst_24 [1] : vector<8x128xf32> to vector<8xf32>
    %51 = vector.shape_cast %50 : vector<8xf32> to vector<8x1xf32>
    %cst_25 = arith.constant 7.812500e-03 : f32
    %52 = vector.broadcast %cst_25 : f32 to vector<8x1xf32>
    %53 = arith.mulf %51, %52 : vector<8x1xf32>
    %54 = arith.mulf %46, %46 : vector<8x128xf32>
    %cst_26 = arith.constant dense<0.000000e+00> : vector<8xf32>
    %55 = vector.multi_reduction <add>, %54, %cst_26 [1] : vector<8x128xf32> to vector<8xf32>
    %56 = vector.shape_cast %55 : vector<8xf32> to vector<8x1xf32>
    %cst_27 = arith.constant 7.812500e-03 : f32
    %57 = vector.broadcast %cst_27 : f32 to vector<8x1xf32>
    %58 = arith.mulf %56, %57 : vector<8x1xf32>
    %59 = arith.mulf %53, %53 : vector<8x1xf32>
    %60 = arith.subf %58, %59 : vector<8x1xf32>
    %cst_28 = arith.constant 9.99999974E-6 : f32
    %61 = vector.broadcast %cst_28 : f32 to vector<8x1xf32>
    %62 = arith.addf %60, %61 : vector<8x1xf32>
    %63 = math.rsqrt %62 : vector<8x1xf32>
    %64 = arith.mulf %48, %63 : vector<8x1xf32>
    %65 = arith.mulf %53, %64 : vector<8x1xf32>
    %66 = arith.subf %49, %65 : vector<8x1xf32>
    %c0_29 = arith.constant 0 : index
    %c0_30 = arith.constant 0 : index
    %67 = vector.load %arg8[%c0_29, %c0_30] : memref<8x1xf32, #tpu.memory_space<vmem>>, vector<8x1xf32>
    tpu.vector_store %arg8[%c0_29, %c0_30], %64 {strides = array<i32>} : memref<8x1xf32, #tpu.memory_space<vmem>>, vector<8x1xf32>,
    %c0_31 = arith.constant 0 : index
    %c0_32 = arith.constant 0 : index
    %68 = vector.load %arg9[%c0_31, %c0_32] : memref<8x1xf32, #tpu.memory_space<vmem>>, vector<8x1xf32>
    tpu.vector_store %arg9[%c0_31, %c0_32], %66 {strides = array<i32>} : memref<8x1xf32, #tpu.memory_space<vmem>>, vector<8x1xf32>,
    return
  }
}

module attributes {stable_mosaic.version = 11 : i64} {
  func.func @_bnrelu_kernel(%arg0: memref<8x128xf32, #tpu.memory_space<vmem>>, %arg1: memref<8x1xf32, #tpu.memory_space<vmem>>, %arg2: memref<8x1xf32, #tpu.memory_space<vmem>>, %arg3: memref<8x128xf32, #tpu.memory_space<vmem>>) attributes {dimension_semantics = [], scalar_prefetch = 0 : i64, scratch_operands = 0 : i64, tpu.core_type = #tpu.core_type<tc>} {
    %c0 = arith.constant 0 : index
    %c0_0 = arith.constant 0 : index
    %0 = vector.load %arg0[%c0, %c0_0] : memref<8x128xf32, #tpu.memory_space<vmem>>, vector<8x128xf32>
    %c0_1 = arith.constant 0 : index
    %c0_2 = arith.constant 0 : index
    %1 = vector.load %arg1[%c0_1, %c0_2] : memref<8x1xf32, #tpu.memory_space<vmem>>, vector<8x1xf32>
    %2 = vector.broadcast %1 : vector<8x1xf32> to vector<8x128xf32>
    %3 = arith.mulf %0, %2 : vector<8x128xf32>
    %c0_3 = arith.constant 0 : index
    %c0_4 = arith.constant 0 : index
    %4 = vector.load %arg2[%c0_3, %c0_4] : memref<8x1xf32, #tpu.memory_space<vmem>>, vector<8x1xf32>
    %5 = vector.broadcast %4 : vector<8x1xf32> to vector<8x128xf32>
    %6 = arith.addf %3, %5 : vector<8x128xf32>
    %cst = arith.constant 0.000000e+00 : f32
    %7 = vector.broadcast %cst : f32 to vector<8x128xf32>
    %8 = arith.maximumf %6, %7 : vector<8x128xf32>
    %c0_5 = arith.constant 0 : index
    %c0_6 = arith.constant 0 : index
    %9 = vector.load %arg3[%c0_5, %c0_6] : memref<8x128xf32, #tpu.memory_space<vmem>>, vector<8x128xf32>
    tpu.vector_store %arg3[%c0_5, %c0_6], %8 {strides = array<i32>} : memref<8x128xf32, #tpu.memory_space<vmem>>, vector<8x128xf32>,
    return
  }
}

</mosaic_0001>

<bundles_post_ra>
// kernel: down_forward.5
= control target key start
LH: loop header
LB: loop body
LE: loop exit
PB: predicated region body
PF: predicated region fallthrough
CT: control target
= control target key end

     0   :  { %v37_v0 = vmov 0   ;;  %s70_s1 = inlined_call_operand.vmem [shape: f32[8,1], index: 1, kind: input, shape index: {}]   ;;  %s71_s2 = inlined_call_operand.vmem [shape: f32[8,1], index: 2, kind: input, shape index: {}]   ;;  %s72_s0 = inlined_call_operand.vmem [shape: f32[8,128], index: 0, kind: input, shape index: {}]   ;;  %s73_s3 = inlined_call_operand.vmem [shape: f32[8,128], index: 3, kind: output, shape index: {}]  }
   0x1   :  { %36 = vset.pattern.permute.xlu0 %v37_v0  ;;  %v15_v1 = vld [vmem:[%s70_s1] sm:$0xff] }
   0x2   :  { %18 = vperm.xlu0 %36, %v15_v1   ;;  %v22_v2 = vld [vmem:[%s71_s2] sm:$0xff] }
   0x3   :  { %v14_v4 = vld [vmem:[%s72_s0] sm:$0xff] }
   0x6   :  { %25 = vperm.xlu0 %36, %v22_v2  }
  0x7d   :  { %v19_v3 = vpop.permute.xlu0 %18 }
  0x7e   :  { %v21_v5 = vmul.f32 %v19_v3, %v14_v4 }
  0x81   :  { %v26_v6 = vpop.permute.xlu0 %25 }
  0x82   :  { %v28_v7 = vadd.f32 %v26_v6, %v21_v5 }
  0x84   :  { %v29_v8 = vmax.f32 %v28_v7, 0.0 }
  0x86   :  { %30 = vst [vmem:[%s73_s3] sm:$0xff] %v29_v8 }

// kernel: down_forward.3
= control target key start
LH: loop header
LB: loop body
LE: loop exit
PB: predicated region body
PF: predicated region fallthrough
CT: control target
= control target key end

     0   :  { %v254_v1 = vmov 0.0   ;;  %s255_s26 = smov 119   ;;  %s256_s27 = smov 121   ;;  %vm259_vm0 = vmmov 0   ;;  %vm95_vm1 = vcmask 588800   ;;  %vm186_vm2 = vcmask 7168   ;;  %s362_s0 = inlined_call_operand.vmem [shape: f32[8,128], index: 0, kind: input, shape index: {}]   ;;  %s363_s1 = inlined_call_operand.vmem [shape: f32[9,128], index: 1, kind: input, shape index: {}]   ;;  %s364_s2 = inlined_call_operand.vmem [shape: f32[8,72], index: 2, kind: input, shape index: {}]   ;;  %s365_s5 = inlined_call_operand.vmem [shape: f32[8,128], index: 5, kind: output, shape index: {0}]   ;;  %s366_s3 = inlined_call_operand.vmem [shape: f32[8,1], index: 3, kind: input, shape index: {}]   ;;  %s367_s4 = inlined_call_operand.vmem [shape: f32[8,1], index: 4, kind: input, shape index: {}]   ;;  %s368_s6 = inlined_call_operand.vmem [shape: f32[8,1], index: 6, kind: output, shape index: {1}]   ;;  %s369_s7 = inlined_call_operand.vmem [shape: f32[8,1], index: 7, kind: output, shape index: {2}]  }
   0x1   :  { %v23_v0 = vld [vmem:[%s362_s0] sm:$0xff]  ;;  %221 = vmatprep.subr.mxu0 %v254_v1  ;;  %s257_s28 = smov 120   ;;  %s258_s29 = smov 127   ;;  %239 = vmatprep.mubr.msk.f32.mxu0 %vm259_vm0, %v254_v1  ;;  %v209_v2 = vld [vmem:[%s363_s1 + $0x8] ss:$0 sm:$0xff] }
   0x2   :  { %87 = vrot.lane.b32.xlu0 %v23_v0, %s255_s26  ;;  %71 = vrot.lane.b32.xlu1 %v23_v0, %s256_s27  ;;  %s260_s30 = smov 1   ;;  %s261_s8 = smov 7   ;;  %v208_v6 = vld [vmem:[%s363_s1 + $0x7] ss:$0 sm:$0xff]  ;;  %v207_v7 = vld [vmem:[%s363_s1 + $0x6] ss:$0 sm:$0xff] }
   0x3   :  { %s262_s9 = smov 8   ;;  %s263_s0 = smov 9   ;;  %v206_v9 = vld [vmem:[%s363_s1 + $0x5] ss:$0 sm:$0xff]  ;;  %v205_v12 = vld [vmem:[%s363_s1 + $0x4] ss:$0 sm:$0xff] }
   0x4   :  { %v204_v15 = vld [vmem:[%s363_s1 + $0x3] ss:$0 sm:$0xff]  ;;  %v62_v18 = vmul.f32 %v205_v12, %v23_v0  ;;  %v203_v19 = vld [vmem:[%s363_s1 + $0x2] ss:$0 sm:$0xff]  ;;  %v202_v21 = vld [vmem:[%s363_s1 + $0x1] ss:$0 sm:$0xff] }
   0x5   :  { %v201_v24 = vld [vmem:[%s363_s1] ss:$0 sm:$0xff] }
   0x6   :  { %79 = vrot.lane.b32.xlu0 %v23_v0, %s257_s28  ;;  %63 = vrot.lane.b32.xlu1 %v23_v0, %s258_s29  ;;  %v24_v28 = vld [vmem:[%s364_s2] sm:$0xff] }
   0x7   :  { %v170_v39 = vld [vmem:[%s366_s3] sm:$0xff] }
   0x8   :  { %v171_v42 = vld [vmem:[%s367_s4] sm:$0xff] }
   0xa   :  { %49 = vrot.lane.b32.xlu0 %v23_v0, %s260_s30  ;;  %41 = vrot.lane.b32.xlu1 %v23_v0, %s261_s8 }
   0xe   :  { %33 = vrot.lane.b32.xlu0 %v23_v0, %s262_s9  ;;  %25 = vrot.lane.b32.xlu1 %v23_v0, %s263_s0 }
  0x74   :  { %v88_v3 = vpop.permute.xlu0 %87  ;;  %v72_v4 = vpop.permute.xlu1 %71 }
  0x75   :  { %v94_v5 = vmul.f32 %v209_v2, %v88_v3  ;;  %v78_v13 = vmul.f32 %v207_v7, %v72_v4 }
  0x77   :  { %222 = vmatpush3.msra.mxu0 %v94_v5 }
  0x78   :  { %v80_v8 = vpop.permute.xlu0 %79  ;;  %223 = vmatprep.subr.mxu0 %v254_v1  ;;  %v64_v10 = vpop.permute.xlu1 %63 }
  0x79   :  { %v86_v11 = vmul.f32 %v208_v6, %v80_v8  ;;  %v70_v14 = vmul.f32 %v206_v9, %v64_v10 }
  0x7b   :  { %224 = vmatpush3.msra.mxu0 %v86_v11 }
  0x7c   :  { %225 = vmatprep.subr.mxu0 %v254_v1  ;;  %v50_v16 = vpop.permute.xlu0 %49  ;;  %v42_v17 = vpop.permute.xlu1 %41 }
  0x7d   :  { %226 = vmatpush3.msra.mxu0 %v78_v13  ;;  %v56_v20 = vmul.f32 %v204_v15, %v50_v16  ;;  %v48_v23 = vmul.f32 %v203_v19, %v42_v17 }
  0x7e   :  { %227 = vmatprep.subr.mxu0 %v254_v1 }
  0x7f   :  { %228 = vmatpush3.msra.mxu0 %v70_v14 }
  0x80   :  { %229 = vmatprep.subr.mxu0 %v254_v1  ;;  %v34_v22 = vpop.permute.xlu0 %33  ;;  %v26_v25 = vpop.permute.xlu1 %25 }
  0x81   :  { %230 = vmatpush3.msra.mxu0 %v62_v18  ;;  %v40_v26 = vmul.f32 %v202_v21, %v34_v22  ;;  %v32_v27 = vmul.f32 %v201_v24, %v26_v25 }
  0x82   :  { %231 = vmatprep.subr.mxu0 %v254_v1 }
  0x83   :  { %232 = vmatpush3.msra.mxu0 %v56_v20 }
  0x84   :  { %233 = vmatprep.subr.mxu0 %v254_v1 }
  0x85   :  { %234 = vmatpush3.msra.mxu0 %v48_v23 }
  0x86   :  { %235 = vmatprep.subr.mxu0 %v254_v1 }
  0x87   :  { %236 = vmatpush3.msra.mxu0 %v40_v26 }
  0x88   :  { %237 = vmatprep.subr.mxu0 %v254_v1 }
  0x89   :  { %238 = vmatpush3.msra.mxu0 %v32_v27 }
  0x8a   :  { %240 = vmatmul.mubr.msk.f32.vlgmr.msra.gmra.mxu0 %vm95_vm1, %v24_v28 }
 0x14a   :  { %v165_v29 = vpop.f32.mrf.mxu0 }
 0x14b   :  { %169 = vst [vmem:[%s365_s5] sm:$0xff] %v165_v29  ;;  %172 = vadd.xlane.f32.xlu0 %v165_v29  ;;  %v175_v30 = vmul.f32 %v165_v29, %v165_v29 }
 0x14c   :  { %v241_v31 = vpop.f32.mrf.mxu0 }
 0x14d   :  { %176 = vadd.xlane.f32.xlu1 %v175_v30 }
 0x1d4   :  { %v173_v32 = vpop.xlane.xlu0 %172 }
 0x1d5   :  { %v174_v33 = vmul.f32 0.0078125, %v173_v32 }
 0x1d6   :  { %v177_v34 = vpop.xlane.xlu1 %176 }
 0x1d7   :  { %v179_v35 = vmul.f32 %v174_v33, %v174_v33  ;;  %v178_v36 = vmul.f32 0.0078125, %v177_v34 }
 0x1d9   :  { %v180_v37 = vsub.f32 %v178_v36, %v179_v35 }
 0x1db   :  { %v181_v38 = vadd.f32 1e-05, %v180_v37 }
 0x1dd   :  { %252 = vrsqrt.f32 %v181_v38 }
 0x1ea   :  { %v253_v40 = vpop.eup %252 }
 0x1eb   :  { %v183_v41 = vmul.f32 %v253_v40, %v170_v39 }
 0x1ed   :  { %v184_v43 = vmul.f32 %v183_v41, %v174_v33  ;;  %187 = vst.msk [vmem:[%s368_s6] sm:$0xff] %vm186_vm2, %v183_v41 }
 0x1ef   :  { %v185_v44 = vsub.f32 %v171_v42, %v184_v43 }
 0x1f1   :  { %188 = vst.msk [vmem:[%s369_s7] sm:$0xff] %vm186_vm2, %v185_v44 }

// kernel: down_forward.4
= control target key start
LH: loop header
LB: loop body
LE: loop exit
PB: predicated region body
PF: predicated region fallthrough
CT: control target
= control target key end

     0   :  { %v277_v0 = vmov 0   ;;  %v278_v3 = vmov 0.0   ;;  %s279_s15 = smov 121   ;;  %s281_s16 = smov 1   ;;  %vm283_vm0 = vmmov 0   ;;  %vm116_vm1 = vcmask 588800   ;;  %s402_s1 = inlined_call_operand.vmem [shape: f32[8,1], index: 1, kind: input, shape index: {}]   ;;  %s403_s2 = inlined_call_operand.vmem [shape: f32[8,1], index: 2, kind: input, shape index: {}]   ;;  %s404_s0 = inlined_call_operand.vmem [shape: f32[8,128], index: 0, kind: input, shape index: {}]   ;;  %s405_s3 = inlined_call_operand.vmem [shape: f32[9,128], index: 3, kind: input, shape index: {}]   ;;  %s406_s4 = inlined_call_operand.vmem [shape: f32[8,72], index: 4, kind: input, shape index: {}]   ;;  %s407_s7 = inlined_call_operand.vmem [shape: f32[8,128], index: 7, kind: output, shape index: {0}]   ;;  %s408_s5 = inlined_call_operand.vmem [shape: f32[8,1], index: 5, kind: input, shape index: {}]   ;;  %s409_s6 = inlined_call_operand.vmem [shape: f32[8,1], index: 6, kind: input, shape index: {}]   ;;  %s410_s8 = inlined_call_operand.vmem [shape: f32[8,1], index: 8, kind: output, shape index: {1}]   ;;  %s411_s9 = inlined_call_operand.vmem [shape: f32[8,1], index: 9, kind: output, shape index: {2}]  }
   0x1   :  { %274 = vset.pattern.permute.xlu0 %v277_v0  ;;  %v30_v1 = vld [vmem:[%s402_s1] sm:$0xff]  ;;  %242 = vmatprep.subr.mxu0 %v278_v3  ;;  %s280_s1 = smov 119   ;;  %s284_s17 = smov 8   ;;  %v230_v10 = vld [vmem:[%s405_s3 + $0x8] ss:$0 sm:$0xff]  ;;  %vm207_vm2 = vcmask 7168  }
   0x2   :  { %33 = vperm.xlu0 %274, %v30_v1   ;;  %v37_v2 = vld [vmem:[%s403_s2] sm:$0xff]  ;;  %s282_s2 = smov 120   ;;  %260 = vmatprep.mubr.msk.f32.mxu0 %vm283_vm0, %v278_v3  ;;  %s285_s18 = smov 127  }
   0x3   :  { %v29_v5 = vld [vmem:[%s404_s0] sm:$0xff]  ;;  %s286_s0 = smov 7   ;;  %s287_s19 = smov 9  }
   0x4   :  { %v229_v14 = vld [vmem:[%s405_s3 + $0x7] ss:$0 sm:$0xff]  ;;  %v228_v15 = vld [vmem:[%s405_s3 + $0x6] ss:$0 sm:$0xff]  ;;  %v227_v18 = vld [vmem:[%s405_s3 + $0x5] ss:$0 sm:$0xff] }
   0x5   :  { %v226_v22 = vld [vmem:[%s405_s3 + $0x4] ss:$0 sm:$0xff]  ;;  %v225_v24 = vld [vmem:[%s405_s3 + $0x3] ss:$0 sm:$0xff]  ;;  %v224_v26 = vld [vmem:[%s405_s3 + $0x2] ss:$0 sm:$0xff] }
   0x6   :  { %40 = vperm.xlu0 %274, %v37_v2   ;;  %v223_v29 = vld [vmem:[%s405_s3 + $0x1] ss:$0 sm:$0xff]  ;;  %v222_v32 = vld [vmem:[%s405_s3] ss:$0 sm:$0xff] }
   0x7   :  { %v45_v36 = vld [vmem:[%s406_s4] sm:$0xff] }
   0x8   :  { %v191_v47 = vld [vmem:[%s408_s5] sm:$0xff] }
   0x9   :  { %v192_v50 = vld [vmem:[%s409_s6] sm:$0xff] }
  0x7d   :  { %v34_v4 = vpop.permute.xlu0 %33 }
  0x7e   :  { %v36_v6 = vmul.f32 %v34_v4, %v29_v5 }
  0x81   :  { %v41_v7 = vpop.permute.xlu0 %40 }
  0x82   :  { %v43_v8 = vadd.f32 %v41_v7, %v36_v6 }
  0x84   :  { %v44_v9 = vmax.f32 %v43_v8, 0.0 }
  0x86   :  { %92 = vrot.lane.b32.xlu0 %v44_v9, %s279_s15  ;;  %108 = vrot.lane.b32.xlu1 %v44_v9, %s280_s1  ;;  %v83_v25 = vmul.f32 %v226_v22, %v44_v9 }
  0x8a   :  { %70 = vrot.lane.b32.xlu0 %v44_v9, %s281_s16  ;;  %100 = vrot.lane.b32.xlu1 %v44_v9, %s282_s2 }
  0x8e   :  { %54 = vrot.lane.b32.xlu0 %v44_v9, %s284_s17  ;;  %84 = vrot.lane.b32.xlu1 %v44_v9, %s285_s18 }
  0x92   :  { %62 = vrot.lane.b32.xlu1 %v44_v9, %s286_s0 }
  0x96   :  { %46 = vrot.lane.b32.xlu1 %v44_v9, %s287_s19 }
  0xf8   :  { %v109_v11 = vpop.permute.xlu1 %108  ;;  %v93_v13 = vpop.permute.xlu0 %92 }
  0xf9   :  { %v115_v12 = vmul.f32 %v230_v10, %v109_v11  ;;  %v99_v19 = vmul.f32 %v228_v15, %v93_v13 }
  0xfb   :  { %243 = vmatpush3.msra.mxu0 %v115_v12 }
  0xfc   :  { %v101_v16 = vpop.permute.xlu1 %100  ;;  %244 = vmatprep.subr.mxu0 %v278_v3  ;;  %v71_v20 = vpop.permute.xlu0 %70 }
  0xfd   :  { %v107_v17 = vmul.f32 %v229_v14, %v101_v16  ;;  %v77_v28 = vmul.f32 %v225_v24, %v71_v20 }
  0xff   :  { %245 = vmatpush3.msra.mxu0 %v107_v17 }
 0x100   :  { %246 = vmatprep.subr.mxu0 %v278_v3  ;;  %v85_v21 = vpop.permute.xlu1 %84  ;;  %v55_v30 = vpop.permute.xlu0 %54 }
 0x101   :  { %v91_v23 = vmul.f32 %v227_v18, %v85_v21  ;;  %247 = vmatpush3.msra.mxu0 %v99_v19  ;;  %v61_v34 = vmul.f32 %v223_v29, %v55_v30 }
 0x102   :  { %248 = vmatprep.subr.mxu0 %v278_v3 }
 0x103   :  { %249 = vmatpush3.msra.mxu0 %v91_v23 }
 0x104   :  { %250 = vmatprep.subr.mxu0 %v278_v3  ;;  %v63_v27 = vpop.permute.xlu1 %62 }
 0x105   :  { %251 = vmatpush3.msra.mxu0 %v83_v25  ;;  %v69_v31 = vmul.f32 %v224_v26, %v63_v27 }
 0x106   :  { %252 = vmatprep.subr.mxu0 %v278_v3 }
 0x107   :  { %253 = vmatpush3.msra.mxu0 %v77_v28 }
 0x108   :  { %v47_v33 = vpop.permute.xlu1 %46  ;;  %254 = vmatprep.subr.mxu0 %v278_v3 }
 0x109   :  { %255 = vmatpush3.msra.mxu0 %v69_v31  ;;  %v53_v35 = vmul.f32 %v222_v32, %v47_v33 }
 0x10a   :  { %256 = vmatprep.subr.mxu0 %v278_v3 }
 0x10b   :  { %257 = vmatpush3.msra.mxu0 %v61_v34 }
 0x10c   :  { %258 = vmatprep.subr.mxu0 %v278_v3 }
 0x10d   :  { %259 = vmatpush3.msra.mxu0 %v53_v35 }
 0x10e   :  { %261 = vmatmul.mubr.msk.f32.vlgmr.msra.gmra.mxu0 %vm116_vm1, %v45_v36 }
 0x1ce   :  { %v186_v37 = vpop.f32.mrf.mxu0 }
 0x1cf   :  { %190 = vst [vmem:[%s407_s7] sm:$0xff] %v186_v37  ;;  %193 = vadd.xlane.f32.xlu0 %v186_v37  ;;  %v196_v38 = vmul.f32 %v186_v37, %v186_v37 }
 0x1d0   :  { %v262_v39 = vpop.f32.mrf.mxu0 }
 0x1d1   :  { %197 = vadd.xlane.f32.xlu1 %v196_v38 }
 0x258   :  { %v194_v40 = vpop.xlane.xlu0 %193 }
 0x259   :  { %v195_v41 = vmul.f32 0.0078125, %v194_v40 }
 0x25a   :  { %v198_v42 = vpop.xlane.xlu1 %197 }
 0x25b   :  { %v200_v43 = vmul.f32 %v195_v41, %v195_v41  ;;  %v199_v44 = vmul.f32 0.0078125, %v198_v42 }
 0x25d   :  { %v201_v45 = vsub.f32 %v199_v44, %v200_v43 }
 0x25f   :  { %v202_v46 = vadd.f32 1e-05, %v201_v45 }
 0x261   :  { %275 = vrsqrt.f32 %v202_v46 }
 0x26e   :  { %v276_v48 = vpop.eup %275 }
 0x26f   :  { %v204_v49 = vmul.f32 %v276_v48, %v191_v47 }
 0x271   :  { %v205_v51 = vmul.f32 %v204_v49, %v195_v41  ;;  %208 = vst.msk [vmem:[%s410_s8] sm:$0xff] %vm207_vm2, %v204_v49 }
 0x273   :  { %v206_v52 = vsub.f32 %v192_v50, %v205_v51 }
 0x275   :  { %209 = vst.msk [vmem:[%s411_s9] sm:$0xff] %vm207_vm2, %v206_v52 }

</bundles_post_ra>
